<compile_context>
chip_gen: v6e
topology: v6e:2x2x1
jax: 0.10.0
libtpu: 0.0.40
codegen_flags: <defaults>
</compile_context>

<pallas_src>
import functools

import jax
import jax.numpy as jnp
from jax.experimental import pallas as pl
from jax.experimental.pallas import tpu as pltpu


def _round_up(a, b):
    return (a + b - 1) // b * b


def _physical_vmem_bytes():
    """Trace-time VMEM query with a conservative fallback (v7x per-TC = 64 MiB)."""
    try:
        info = pltpu.get_tpu_info()
        v = int(getattr(info, "vmem_capacity_bytes", 0) or 0)
        if v > 0:
            return v
    except Exception:
        pass
    return 64 * 1024 * 1024


def _dnorm2_kernel(*refs, d, tile_d, chunk, steps_per_shard, mask_needed,
                   symmetric):
    """Accumulate one shard's partial dnorm2 = -2 X Y^T + diag(XX^T) + diag(YY^T)^T."""
    if symmetric:
        x_ref, out_ref, xy_acc, xx_part = refs
        y_ref = None
        yy_part = None
    else:
        x_ref, y_ref, out_ref, xy_acc, xx_part, yy_part = refs

    s = pl.program_id(0)                       # D-shard (parallel across TCs)
    k = pl.program_id(1)                       # D-step within the shard
    step = s * steps_per_shard + k             # un-clamped global D-step index

    @pl.when(k == 0)
    def _init():
        xy_acc[...] = jnp.zeros_like(xy_acc)
        xx_part[...] = jnp.zeros_like(xx_part)
        if not symmetric:
            yy_part[...] = jnp.zeros_like(yy_part)

    n_chunks = tile_d // chunk

    @pl.loop(0, n_chunks)
    def _chunk(j):
        base = pl.multiple_of(j * chunk, chunk)
        xc = x_ref[:, pl.ds(base, chunk)]
        yc = xc if symmetric else y_ref[:, pl.ds(base, chunk)]
        if mask_needed:
            # Zero lanes past D (ragged tail / clamped duplicate steps) before
            # BOTH the dot and the square-sums so they contribute exactly 0.
            lim = d - step * tile_d - base
            xc = jnp.where(
                jax.lax.broadcasted_iota(jnp.int32, xc.shape, 1) < lim, xc, 0)
            if symmetric:
                yc = xc
            else:
                yc = jnp.where(
                    jax.lax.broadcasted_iota(jnp.int32, yc.shape, 1) < lim,
                    yc, 0)

        # X_chunk @ Y_chunk^T on the MXU, f32 accumulation (no materialized .T).
        xy_acc[...] += jax.lax.dot_general(
            xc, yc,
            dimension_numbers=(((1,), (1,)), ((), ())),
            preferred_element_type=jnp.float32)

        # Lane-partial sum-of-squares: pure VPU square+add per chunk; the
        # cross-lane reduce happens once at finalize.
        xf = xc.astype(jnp.float32)
        xx_part[...] += xf * xf
        if not symmetric:
            yf = yc.astype(jnp.float32)
            yy_part[...] += yf * yf

    @pl.when(k == steps_per_shard - 1)
    def _finalize():
        xx = jnp.sum(xx_part[...], axis=1, keepdims=True)            # [N, 1]
        yy = xx if symmetric else jnp.sum(yy_part[...], axis=1, keepdims=True)
        out_ref[0] = (-2.0 * xy_acc[...] + xx + yy.T).astype(out_ref.dtype)


def _rbf_dnorm2_partials(x, y, *, symmetric, num_shards, target_step_bytes):
    """Per-shard partial dnorm2 slabs of shape [num_shards, N, M] (f32)."""
    n, d = x.shape
    m = n if symmetric else y.shape[0]
    rows = n if symmetric else n + m
    itemsize = jnp.dtype(x.dtype).itemsize
    if not symmetric:
        itemsize = max(itemsize, jnp.dtype(y.dtype).itemsize)

    # Inner chunk bounds per-step VMEM temporaries / vreg pressure.
    chunk = min(2048, _round_up(d, 128))
    d_cover = _round_up(d, chunk)

    # Generation-aware VMEM budget.
    phys = _physical_vmem_bytes()
    cap = (56 << 20) if phys <= (80 << 20) else (96 << 20)

    fixed_bytes = 4 * (2 * n * m                 # double-buffered output block
                       + n * m                   # xy accumulator
                       + n * chunk               # xx lane-partials
                       + (0 if symmetric else m * chunk))
    budget = max(0, cap - fixed_bytes - (6 << 20))          # compiler headroom
    tile_cap = max(chunk, (budget // (2 * rows * itemsize)) // chunk * chunk)
    tile_tgt = max(chunk,
                   (target_step_bytes // (rows * itemsize)) // chunk * chunk)
    tile_d = max(chunk, min(tile_tgt, tile_cap, d_cover))

    total_steps = pl.cdiv(d, tile_d)
    num_shards = max(1, min(int(num_shards), total_steps))
    steps_per_shard = pl.cdiv(total_steps, num_shards)
    last_block = total_steps - 1
    # Mask whenever the grid covers more lanes than D (ragged tail and/or
    # clamped duplicate steps when total_steps % num_shards != 0).
    mask_needed = (num_shards * steps_per_shard * tile_d) != d

    def d_index_map(s, k):
        # Clamp so duplicate trailing steps re-read a valid block (their data
        # is fully masked in-kernel), never an out-of-bounds one.
        return (0, jnp.minimum(s * steps_per_shard + k, last_block))

    in_specs = [pl.BlockSpec((n, tile_d), d_index_map)]
    operands = [x]
    if not symmetric:
        in_specs.append(pl.BlockSpec((m, tile_d), d_index_map))
        operands.append(y)

    scratch = [pltpu.VMEM((n, m), jnp.float32),         # X Y^T accumulator
               pltpu.VMEM((n, chunk), jnp.float32)]     # lane-partial diag(XX^T)
    if not symmetric:
        scratch.append(pltpu.VMEM((m, chunk), jnp.float32))  # diag(YY^T)

    vmem_limit = int(min(cap, max(32 << 20,
                                  2 * rows * tile_d * itemsize
                                  + fixed_bytes + (4 << 20))))

    kernel = functools.partial(
        _dnorm2_kernel, d=d, tile_d=tile_d, chunk=chunk,
        steps_per_shard=steps_per_shard, mask_needed=mask_needed,
        symmetric=symmetric)

    return pl.pallas_call(
        kernel,
        out_shape=jax.ShapeDtypeStruct((num_shards, n, m), jnp.float32),
        grid=(num_shards, steps_per_shard),
        in_specs=in_specs,
        out_specs=pl.BlockSpec((1, n, m), lambda s, k: (s, 0, 0)),
        scratch_shapes=scratch,
        compiler_params=pltpu.CompilerParams(
            dimension_semantics=("parallel", "arbitrary"),
            vmem_limit_bytes=vmem_limit,
        ),
    )(*operands)


def rbf_forward(X, Y, sigma=None, *, symmetric=None, num_shards=2,
                target_step_bytes=16 << 20, stream_dtype=None):
    """Pallas equivalent of RBF(sigma).forward(X, Y).

    symmetric: force/deny the X==Y fast path (default: detected via `X is Y`).
    num_shards: split the D reduction across TensorCores (2 helps on v7x,
      ~free elsewhere).
    stream_dtype: optionally stream inputs in bf16 (halves HBM bytes; all
      accumulation stays f32).
    """
    if symmetric is None:
        symmetric = X is Y
    X = jnp.asarray(X)
    Y = X if symmetric else jnp.asarray(Y)
    if stream_dtype is not None:
        X = X.astype(stream_dtype)
        Y = X if symmetric else Y.astype(stream_dtype)

    partials = _rbf_dnorm2_partials(
        X, Y, symmetric=symmetric, num_shards=num_shards,
        target_step_bytes=target_step_bytes)
    dnorm2 = partials[0] if partials.shape[0] == 1 else jnp.sum(partials, axis=0)

    n = X.shape[0]
    if sigma is None:
        # TODO(synk): the median bandwidth heuristic (a sort) has no clean
        # Pallas TPU equivalent; it stays in plain JAX (matches np.median).
        h = jnp.median(dnorm2) / (2.0 * jnp.log(n + 1.0))
        sigma = jnp.sqrt(h)
    gamma = 1.0 / (1e-08 + 2.0 * jnp.asarray(sigma, jnp.float32) ** 2)
    # [N, M] is tiny (particles x particles): XLA fuses the exp with the gamma
    # math; a dedicated Pallas launch here would only add overhead.
    return jnp.exp(-gamma * dnorm2)


if __name__ == "__main__":
    key = jax.random.PRNGKey(0)
    kx, ky = jax.random.split(key)
    N, D = 8, 5000                     # N particles, D flattened-parameter dim
    X = jax.random.normal(kx, (N, D), dtype=jnp.float32)
    Y = jax.random.normal(ky, (N, D), dtype=jnp.float32)

    def dnorm2_ref(a, b):
        return (-2.0 * (a @ b.T)
                + jnp.sum(a * a, 1)[:, None] + jnp.sum(b * b, 1)[None, :])

    # 1) Symmetric fast path (Y is X) + median-bandwidth sigma; default tiling
    #    -> single shard, multi-chunk inner loop, ragged-D masking.
    d_xx = dnorm2_ref(X, X)
    h1 = jnp.median(d_xx) / (2.0 * jnp.log(N + 1.0))
    sigma1 = jnp.sqrt(h1)
    gamma1 = 1.0 / (1e-08 + 2.0 * sigma1 ** 2)
    K1_ref = jnp.exp(-gamma1 * d_xx)
    K1 = jax.block_until_ready(rbf_forward(X, X, sigma=None))
    assert K1.shape == (N, N) and K1.dtype == jnp.float32
    assert jnp.allclose(K1, K1_ref, rtol=1e-4, atol=1e-4), \
        float(jnp.max(jnp.abs(K1 - K1_ref)))

    # 2) General X, Y with fixed sigma; tiny per-step budget forces a
    #    multi-step, 2-shard grid (tests the index clamp + duplicate-step
    #    masking + cross-shard combine).
    sigma0 = 60.0
    gamma0 = 1.0 / (1e-08 + 2.0 * sigma0 ** 2)
    K2_ref = jnp.exp(-gamma0 * dnorm2_ref(X, Y))
    K2 = jax.block_until_ready(
        rbf_forward(X, Y, sigma=sigma0, num_shards=2, target_step_bytes=8192))
    assert K2.shape == (N, N) and K2.dtype == jnp.float32
    assert jnp.allclose(K2, K2_ref, rtol=1e-4, atol=1e-4), \
        float(jnp.max(jnp.abs(K2 - K2_ref)))

    # 3) General X, Y + median-bandwidth sigma, default tiling.
    d_xy = dnorm2_ref(X, Y)
    h3 = jnp.median(d_xy) / (2.0 * jnp.log(N + 1.0))
    sigma3 = jnp.sqrt(h3)
    gamma3 = 1.0 / (1e-08 + 2.0 * sigma3 ** 2)
    K3_ref = jnp.exp(-gamma3 * d_xy)
    K3 = jax.block_until_ready(rbf_forward(X, Y, sigma=None))
    assert jnp.allclose(K3, K3_ref, rtol=1e-4, atol=1e-4), \
        float(jnp.max(jnp.abs(K3 - K3_ref)))

    print("KERNEL_OK")
</pallas_src>

<mosaic_0001>
module attributes {stable_mosaic.version = 11 : i64} {
  func.func @_dnorm2_kernel(%arg0: i32, %arg1: i32, %arg2: memref<8x6144xf32, #tpu.memory_space<vmem>>, %arg3: memref<1x8x8xf32, #tpu.memory_space<vmem>>, %arg4: memref<8x8xf32, #tpu.memory_space<vmem>>, %arg5: memref<8x2048xf32, #tpu.memory_space<vmem>>) attributes {dimension_semantics = [#tpu.dimension_semantics<parallel>, #tpu.dimension_semantics<arbitrary>], iteration_bounds = array<i64: 1, 1>, scalar_prefetch = 0 : i64, scratch_operands = 2 : i64, tpu.core_type = #tpu.core_type<tc>, window_params = [{transform_indices = @transform_0, window_bounds = array<i64: 8, 6144>}, {transform_indices = @transform_1, window_bounds = array<i64: 1, 8, 8>}]} {
    %c1_i32 = arith.constant 1 : i32
    %0 = arith.muli %arg0, %c1_i32 : i32
    %1 = arith.addi %0, %arg1 : i32
    %c0_i32 = arith.constant 0 : i32
    %2 = arith.cmpi eq, %arg1, %c0_i32 : i32
    %3 = arith.extui %2 : i1 to i32
    %c0_i32_0 = arith.constant 0 : i32
    %4 = arith.cmpi ne, %3, %c0_i32_0 : i32
    scf.if %4 {
      %cst = arith.constant 0.000000e+00 : f32
      %9 = vector.broadcast %cst : f32 to vector<8x8xf32>
      %c0 = arith.constant 0 : index
      %c0_6 = arith.constant 0 : index
      %10 = vector.load %arg4[%c0, %c0_6] : memref<8x8xf32, #tpu.memory_space<vmem>>, vector<8x8xf32>
      tpu.vector_store %arg4[%c0, %c0_6], %9 {strides = array<i32>} : memref<8x8xf32, #tpu.memory_space<vmem>>, vector<8x8xf32>,
      %cst_7 = arith.constant 0.000000e+00 : f32
      %11 = vector.broadcast %cst_7 : f32 to vector<8x2048xf32>
      %c0_8 = arith.constant 0 : index
      %c0_9 = arith.constant 0 : index
      %12 = vector.load %arg5[%c0_8, %c0_9] : memref<8x2048xf32, #tpu.memory_space<vmem>>, vector<8x2048xf32>
      tpu.vector_store %arg5[%c0_8, %c0_9], %11 {strides = array<i32>} : memref<8x2048xf32, #tpu.memory_space<vmem>>, vector<8x2048xf32>,
    } else {
    }
    %c0_i32_1 = arith.constant 0 : i32
    %c3_i32 = arith.constant 3 : i32
    %5 = arith.addi %c0_i32_1, %c3_i32 : i32
    %c1_i32_2 = arith.constant 1 : i32
    scf.for %arg6 = %c0_i32_1 to %5 step %c1_i32_2  : i32 {
      %c1_i32_6 = arith.constant 1 : i32
      %9 = arith.muli %arg6, %c1_i32_6 : i32
      %c0_i32_7 = arith.constant 0 : i32
      %10 = arith.addi %c0_i32_7, %9 : i32
      %c2048_i32 = arith.constant 2048 : i32
      %11 = arith.muli %10, %c2048_i32 : i32
      %12 = tpu.assume_multiple %11, 2048 : i32
      %c0 = arith.constant 0 : index
      %13 = arith.index_cast %12 : i32 to index
      %14 = vector.load %arg2[%c0, %13] : memref<8x6144xf32, #tpu.memory_space<vmem>>, vector<8x2048xf32>
      %c6144_i32 = arith.constant 6144 : i32
      %15 = arith.muli %1, %c6144_i32 : i32
      %c5000_i32 = arith.constant 5000 : i32
      %16 = arith.subi %c5000_i32, %15 : i32
      %17 = arith.subi %16, %12 : i32
      %18 = tpu.iota {dimensions = array<i32: 1>} : vector<8x2048xi32>
      %19 = vector.broadcast %17 : i32 to vector<8x2048xi32>
      %20 = arith.cmpi slt, %18, %19 : vector<8x2048xi32>
      %c0_i32_8 = arith.constant 0 : i32
      %21 = arith.sitofp %c0_i32_8 : i32 to f32
      %22 = vector.broadcast %21 : f32 to vector<8x2048xf32>
      %23 = arith.select %20, %14, %22 : vector<8x2048xi1>, vector<8x2048xf32>
      %c0_9 = arith.constant 0 : index
      %c0_10 = arith.constant 0 : index
      %24 = vector.load %arg4[%c0_9, %c0_10] : memref<8x8xf32, #tpu.memory_space<vmem>>, vector<8x8xf32>
      %cst = arith.constant dense<0.000000e+00> : vector<8x8xf32>
      %25 = tpu.matmul %23, %23, %cst {dimension_numbers = #tpu.dot_dimension_numbers<[1], [1], [0], [0], [0, 0, 1, 0], [], []>} : vector<8x2048xf32>, vector<8x2048xf32>, vector<8x8xf32> -> vector<8x8xf32>
      %26 = arith.addf %24, %25 : vector<8x8xf32>
      %c0_11 = arith.constant 0 : index
      %c0_12 = arith.constant 0 : index
      %27 = vector.load %arg4[%c0_11, %c0_12] : memref<8x8xf32, #tpu.memory_space<vmem>>, vector<8x8xf32>
      tpu.vector_store %arg4[%c0_11, %c0_12], %26 {strides = array<i32>} : memref<8x8xf32, #tpu.memory_space<vmem>>, vector<8x8xf32>,
      %c0_13 = arith.constant 0 : index
      %c0_14 = arith.constant 0 : index
      %28 = vector.load %arg5[%c0_13, %c0_14] : memref<8x2048xf32, #tpu.memory_space<vmem>>, vector<8x2048xf32>
      %29 = arith.mulf %23, %23 : vector<8x2048xf32>
      %30 = arith.addf %28, %29 : vector<8x2048xf32>
      %c0_15 = arith.constant 0 : index
      %c0_16 = arith.constant 0 : index
      %31 = vector.load %arg5[%c0_15, %c0_16] : memref<8x2048xf32, #tpu.memory_space<vmem>>, vector<8x2048xf32>
      tpu.vector_store %arg5[%c0_15, %c0_16], %30 {strides = array<i32>} : memref<8x2048xf32, #tpu.memory_space<vmem>>, vector<8x2048xf32>,
    }
    %c3_i32_3 = arith.constant 3 : i32
    %c0_i32_4 = arith.constant 0 : i32
    %6 = arith.cmpi eq, %arg1, %c0_i32_4 : i32
    %7 = arith.extui %6 : i1 to i32
    %c0_i32_5 = arith.constant 0 : i32
    %8 = arith.cmpi ne, %7, %c0_i32_5 : i32
    scf.if %8 {
      %c0 = arith.constant 0 : index
      %c0_6 = arith.constant 0 : index
      %9 = vector.load %arg5[%c0, %c0_6] : memref<8x2048xf32, #tpu.memory_space<vmem>>, vector<8x2048xf32>
      %cst = arith.constant dense<0.000000e+00> : vector<8xf32>
      %10 = vector.multi_reduction <add>, %9, %cst [1] : vector<8x2048xf32> to vector<8xf32>
      %11 = vector.shape_cast %10 : vector<8xf32> to vector<8x1xf32>
      %c0_7 = arith.constant 0 : index
      %c0_8 = arith.constant 0 : index
      %12 = vector.load %arg4[%c0_7, %c0_8] : memref<8x8xf32, #tpu.memory_space<vmem>>, vector<8x8xf32>
      %cst_9 = arith.constant -2.000000e+00 : f32
      %13 = vector.broadcast %cst_9 : f32 to vector<8x8xf32>
      %14 = arith.mulf %13, %12 : vector<8x8xf32>
      %15 = vector.broadcast %11 : vector<8x1xf32> to vector<8x8xf32>
      %16 = arith.addf %14, %15 : vector<8x8xf32>
      %17 = tpu.transpose %11, [1, 0] : vector<8x1xf32> -> vector<1x8xf32>
      %18 = vector.broadcast %17 : vector<1x8xf32> to vector<8x8xf32>
      %19 = arith.addf %16, %18 : vector<8x8xf32>
      %c0_10 = arith.constant 0 : index
      %c0_11 = arith.constant 0 : index
      %c0_12 = arith.constant 0 : index
      %20 = vector.load %arg3[%c0_10, %c0_11, %c0_12] : memref<1x8x8xf32, #tpu.memory_space<vmem>>, vector<1x8x8xf32>
      %21 = vector.shape_cast %20 : vector<1x8x8xf32> to vector<8x8xf32>
      %22 = vector.shape_cast %19 : vector<8x8xf32> to vector<1x8x8xf32>
      tpu.vector_store %arg3[%c0_10, %c0_11, %c0_12], %22 {strides = array<i32>} : memref<1x8x8xf32, #tpu.memory_space<vmem>>, vector<1x8x8xf32>,
    } else {
    }
    return
  }
  func.func @transform_0(%arg0: i32, %arg1: i32) -> (i32, i32) {
    %c1_i32 = arith.constant 1 : i32
    %0 = arith.muli %arg0, %c1_i32 : i32
    %1 = arith.addi %0, %arg1 : i32
    %c0_i32 = arith.constant 0 : i32
    %2 = arith.minsi %1, %c0_i32 : i32
    %c0_i32_0 = arith.constant 0 : i32
    %c0_i32_1 = arith.constant 0 : i32
    return %c0_i32_0, %2 : i32, i32
  }
  func.func @transform_1(%arg0: i32, %arg1: i32) -> (i32, i32, i32) {
    %c0_i32 = arith.constant 0 : i32
    %c0_i32_0 = arith.constant 0 : i32
    %c0_i32_1 = arith.constant 0 : i32
    return %arg0, %c0_i32, %c0_i32_0 : i32, i32, i32
  }
}

</mosaic_0001>

<bundles_post_ra>
// kernel: tpu_custom_call.1
= control target key start
LH: loop header
LB: loop body
LE: loop exit
PB: predicated region body
PF: predicated region fallthrough
CT: control target
= control target key end

     0   :  { %6 = vsyncpa [#allocation5], 0  ;;  %s1177_s0 = inlined_call_operand.hbm [shape: f32[8,5000], index: 0, kind: input, shape index: {}]   ;;  %s1178_s1 = inlined_call_operand.hbm [shape: f32[1,8,8], index: 1, kind: output, shape index: {}]  }
   0x1   :  { %7 = vsyncpa [#allocation6], 0 }
   0x2   :  { %18 = vsyncadd [#allocation5], 1024  ;;  %s967_s6 = smov [#allocation4]  }
   0x3   :  { %s24_s7 = sshll.u32 %s967_s6, 4  ;;  %s25_s7 = int_to_ptr.vmem [resolvable:$true] %s24_s7 }
   0x4   :  { %s923_s8 = scalar_lea.vmem %s25_s7, 5120  ;;  %s927_s9 = scalar_lea.vmem %s25_s7, 6144 }
   0x5   :  { %p924_p0 = scmp.ne.s32.totalorder %s25_s7, %s923_s8  ;;  %p928_p1 = scmp.lt.s32.totalorder %s25_s7, %s25_s7 }
   0x6   :  { %p929_p2 = scmp.lt.s32.totalorder %s927_s9, %s923_s8 }
   0x8   :  { %p930_p3 = por %p929_p2, %p928_p1 }
   0xa   :  { %p931_p4 = pnand %p930_p3, %p924_p0 }
   0xc   :  { %934 = shalt.err (!%p931_p4)
}
   0xd   :  { %27 = dma.hbm_to_vmem [thread:$0]  %s1177_s0, 5120, %s25_s7, [#allocation5]  }
   0xe   :  { %959 = dma.done.wait [#allocation5], 6144  }
   0xf   :  { %960 = vsyncadd [#allocation5], 4294961152  ;;  %vm42_vm0 = vcmask 64512   ;;  %v968_v0 = vmov 0.0   ;;  %s984_s0 = smov 0  }
  0x10   :  { %43 = vst.msk [vmem:[#allocation2] sm:$0xff] %vm42_vm0, %v968_v0  ;;  %44 = vst [vmem:[#allocation3 + $0x30] sm:$0xff] %v968_v0 }
  0x11   :  { %45 = vst [vmem:[#allocation3] sm:$0xff] %v968_v0  ;;  %46 = vst [vmem:[#allocation3 + $0x58] sm:$0xff] %v968_v0 }
  0x12   :  { %47 = vst [vmem:[#allocation3 + $0x18] sm:$0xff] %v968_v0  ;;  %48 = vst [vmem:[#allocation3 + $0x50] sm:$0xff] %v968_v0 }
  0x13   :  { %49 = vst [vmem:[#allocation3 + $0x68] sm:$0xff] %v968_v0  ;;  %50 = vst [vmem:[#allocation3 + $0x8] sm:$0xff] %v968_v0 }
  0x14   :  { %51 = vst [vmem:[#allocation3 + $0x48] sm:$0xff] %v968_v0  ;;  %52 = vst [vmem:[#allocation3 + $0x40] sm:$0xff] %v968_v0 }
  0x15   :  { %53 = vst [vmem:[#allocation3 + $0x20] sm:$0xff] %v968_v0  ;;  %54 = vst [vmem:[#allocation3 + $0x10] sm:$0xff] %v968_v0 }
  0x16   :  { %55 = vst [vmem:[#allocation3 + $0x38] sm:$0xff] %v968_v0  ;;  %56 = vst [vmem:[#allocation3 + $0x60] sm:$0xff] %v968_v0 }
  0x17   :  { %57 = vst [vmem:[#allocation3 + $0x70] sm:$0xff] %v968_v0  ;;  %58 = vst [vmem:[#allocation3 + $0x78] sm:$0xff] %v968_v0 }
  0x18   :  { %59 = vst [vmem:[#allocation3 + $0x28] sm:$0xff] %v968_v0 }
  0x19 LB: > { %v90_v1 = vlaneseq  ;;  %s870_s12 = sshll.u32 %s965_s0, 11  ;;  %v705_v7 = vld [vmem:[#allocation3] sm:$0xff]  ;;  %v704_v8 = vld [vmem:[#allocation3 + $0x30] sm:$0xff]  ;;  %v707_v19 = vld [vmem:[#allocation3 + $0x18] sm:$0xff]  ;;  %s65_s0 = sadd.s32 1, %s965_s0   ;;  %s965_s0 = sphi %s984_s0, %s65_s0  }
  0x1a   : > { %s67_s13 = sshra.s32 %s870_s12, 7  ;;  %s89_s14 = ssub.s32 5000, %s870_s12  ;;  %v706_v26 = vld [vmem:[#allocation3 + $0x58] sm:$0xff]  ;;  %v709_v29 = vld [vmem:[#allocation3 + $0x68] sm:$0xff]  ;;  %v708_v39 = vld [vmem:[#allocation3 + $0x50] sm:$0xff] }
  0x1b   : > { %v991_v2 = vand.u32 127, %v90_v1  ;;  %s871_s15 = sshll.u32 %s67_s13, 3  ;;  %v994_v4 = vstv %s89_s14  ;;  %v711_v41 = vld [vmem:[#allocation3 + $0x48] sm:$0xff]  ;;  %v712_v63 = vld [vmem:[#allocation3 + $0x40] sm:$0xff]  ;;  %p62_p5 = scmp.ge.s32.totalorder %s65_s0, 3  }
  0x1c   : > { %s1009_s16 = scalar_lea.vmem [#allocation4], %s871_s15  ;;  %v710_v46 = vld [vmem:[#allocation3 + $0x8] sm:$0xff]  ;;  %v713_v59 = vld [vmem:[#allocation3 + $0x20] sm:$0xff]  ;;  %s969_s17 = smov (%p62_p5), [#allocation7]  }
  0x1d   : > { %v92_v3 = vadd.s32 128, %v991_v2  ;;  %v94_v5 = vadd.s32 384, %v991_v2  ;;  %v93_v6 = vadd.s32 256, %v991_v2  ;;  %vm108_vm1 = vcmp.lt.s32.totalorder %v991_v2, %v994_v4  ;;  %v72_v12 = vld [vmem:[%s1009_s16 + $0x8] sm:$0xff]  ;;  %v71_v13 = vld [vmem:[%s1009_s16] sm:$0xff]  ;;  %v74_v14 = vld [vmem:[%s1009_s16 + $0x18] sm:$0xff] }
  0x1e   : > { %v1001_v9 = vadd.s32 640, %v991_v2  ;;  %v1004_v10 = vadd.s32 512, %v991_v2  ;;  %v1007_v11 = vadd.s32 896, %v991_v2  ;;  %v1018_v15 = vadd.s32 768, %v991_v2  ;;  %v73_v20 = vld [vmem:[%s1009_s16 + $0x10] sm:$0xff]  ;;  %v76_v21 = vld [vmem:[%s1009_s16 + $0x28] sm:$0xff] }
  0x1f   : > { %vm109_vm2 = vcmp.lt.s32.totalorder %v92_v3, %v994_v4  ;;  %vm111_vm3 = vcmp.lt.s32.totalorder %v94_v5, %v994_v4  ;;  %vm110_vm4 = vcmp.lt.s32.totalorder %v93_v6, %v994_v4  ;;  %v124_v17 = vsel %vm108_vm1, %v71_v13, 0.0  ;;  %v75_v30 = vld [vmem:[%s1009_s16 + $0x20] sm:$0xff]  ;;  %v78_v31 = vld [vmem:[%s1009_s16 + $0x38] sm:$0xff]  ;;  %v77_v36 = vld [vmem:[%s1009_s16 + $0x30] sm:$0xff]  ;;  %s852_s18 = sshll.u32 (%p62_p5), %s969_s17, 4  ;;  %s853_s18 = int_to_ptr.vmem [resolvable:$true] %s852_s18 }
  0x20   : > { %v125_v16 = vsel %vm109_vm2, %v72_v12, 0.0  ;;  %872 = vmatprep.subr.msk.mxu0 %vm109_vm2, %v72_v12  ;;  %v127_v18 = vsel %vm111_vm3, %v74_v14, 0.0  ;;  %876 = vmatprep.subr.msk.mxu1 %vm111_vm3, %v74_v14  ;;  %vm113_vm5 = vcmp.lt.s32.totalorder %v1001_v9, %v994_v4  ;;  %v720_v23 = vmul.f32 %v124_v17, %v124_v17  ;;  %v80_v48 = vld [vmem:[%s1009_s16 + $0x48] sm:$0xff]  ;;  %v79_v54 = vld [vmem:[%s1009_s16 + $0x40] sm:$0xff]  ;;  %v82_v55 = vld [vmem:[%s1009_s16 + $0x58] sm:$0xff]  ;;  %s935_s19 = scalar_lea.vmem (%p62_p5), %s853_s18, 128  ;;  %p940_p7 = scmp.lt.s32.totalorder (%p62_p5), %s853_s18, %s853_s18 }
  0x21   : > { %v721_v22 = vmul.f32 %v125_v16, %v125_v16  ;;  %873 = vmatpush1.xpose.msk.msra.mxu0 %vm108_vm1, %v71_v13  ;;  %v723_v24 = vmul.f32 %v127_v18, %v127_v18  ;;  %v126_v25 = vsel %vm110_vm4, %v73_v20, 0.0  ;;  %877 = vmatpush1.xpose.msk.msra.mxu1 %vm110_vm4, %v73_v20  ;;  %v129_v28 = vsel %vm113_vm5, %v76_v21, 0.0  ;;  %v81_v60 = vld [vmem:[%s1009_s16 + $0x50] sm:$0xff]  ;;  %v715_v3 = vld [vmem:[#allocation3 + $0x38] sm:$0xff]  ;;  %v84_v5 = vld [vmem:[%s1009_s16 + $0x68] sm:$0xff]  ;;  %p936_p6 = scmp.ne.s32.totalorder (%p62_p5), %s853_s18, %s935_s19  ;;  %p941_p8 = scmp.lt.s32.totalorder (%p62_p5), %s935_s19, %s935_s19 }
  0x22   : > { %v722_v27 = vmul.f32 %v126_v25, %v126_v25  ;;  %874 = vmatprep.mubr.msk.f32.mxu0 %vm109_vm2, %v72_v12  ;;  %878 = vmatprep.mubr.msk.f32.mxu1 %vm111_vm3, %v74_v14  ;;  %vm112_vm6 = vcmp.lt.s32.totalorder %v1004_v10, %v994_v4  ;;  %vm115_vm7 = vcmp.lt.s32.totalorder %v1007_v11, %v994_v4  ;;  %v100_v49 = vadd.s32 1152, %v991_v2  ;;  %v714_v10 = vld [vmem:[#allocation3 + $0x10] sm:$0xff]  ;;  %v83_v12 = vld [vmem:[%s1009_s16 + $0x60] sm:$0xff] }
  0x23   : > { %v737_v32 = vadd.f32 %v721_v22, %v705_v7  ;;  %v736_v33 = vadd.f32 %v720_v23, %v704_v8  ;;  %v739_v34 = vadd.f32 %v723_v24, %v707_v19  ;;  %880 = vmatprep.subr.msk.mxu0 %vm113_vm5, %v76_v21  ;;  %v725_v35 = vmul.f32 %v129_v28, %v129_v28  ;;  %v717_v19 = vld [vmem:[#allocation3 + $0x70] sm:$0xff]  ;;  %v716_v24 = vld [vmem:[#allocation3 + $0x60] sm:$0xff]  ;;  %p942_p9 = por (%p62_p5), %p941_p8, %p940_p7 }
  0x24   : > { %v738_v37 = vadd.f32 %v722_v27, %v706_v26  ;;  %875 = vmatmul.mubr.msk.f32.vlgmr.msra.gmra.mxu0 %vm108_vm1, %v71_v13  ;;  %879 = vmatmul.mubr.msk.f32.vlgmr.msra.gmra.mxu1 %vm110_vm4, %v73_v20  ;;  %v128_v38 = vsel %vm112_vm6, %v75_v30, 0.0  ;;  %v131_v40 = vsel %vm115_vm7, %v78_v31, 0.0  ;;  %vm114_vm8 = vcmp.lt.s32.totalorder %v1018_v15, %v994_v4  ;;  %v86_v20 = vld [vmem:[%s1009_s16 + $0x78] sm:$0xff]  ;;  %v719_v26 = vld [vmem:[#allocation3 + $0x28] sm:$0xff] }
  0x25   : > { %753 = vst [vmem:[#allocation3] sm:$0xff] %v737_v32  ;;  %752 = vst [vmem:[#allocation3 + $0x30] sm:$0xff] %v736_v33  ;;  %v741_v42 = vadd.f32 %v725_v35, %v709_v29  ;;  %881 = vmatpush1.xpose.msk.msra.mxu0 %vm112_vm6, %v75_v30  ;;  %v724_v43 = vmul.f32 %v128_v38, %v128_v38  ;;  %884 = vmatprep.subr.msk.mxu1 %vm115_vm7, %v78_v31  ;;  %v130_v45 = vsel %vm114_vm8, %v77_v36, 0.0  ;;  %v85_v27 = vld [vmem:[%s1009_s16 + $0x70] sm:$0xff]  ;;  %p943_p10 = pnand (%p62_p5), %p942_p9, %p936_p6 }
  0x26   : > { %755 = vst [vmem:[#allocation3 + $0x18] sm:$0xff] %v739_v34  ;;  %v727_v44 = vmul.f32 %v131_v40, %v131_v40  ;;  %754 = vst [vmem:[#allocation3 + $0x58] sm:$0xff] %v738_v37  ;;  %885 = vmatpush1.xpose.msk.msra.mxu1 %vm114_vm8, %v77_v36  ;;  %v726_v47 = vmul.f32 %v130_v45, %v130_v45  ;;  %882 = vmatprep.mubr.msk.f32.mxu0 %vm113_vm5, %v76_v21  ;;  %v99_v50 = vadd.s32 1024, %v991_v2  ;;  %v718_v34 = vld [vmem:[#allocation3 + $0x78] sm:$0xff] }
  0x27   : > { %v102_v51 = vadd.s32 1408, %v991_v2  ;;  %757 = vst [vmem:[#allocation3 + $0x68] sm:$0xff] %v741_v42  ;;  %v740_v52 = vadd.f32 %v724_v43, %v708_v39  ;;  %886 = vmatprep.mubr.msk.f32.mxu1 %vm115_vm7, %v78_v31  ;;  %v101_v56 = vadd.s32 1280, %v991_v2  ;;  %v1098_v57 = vadd.s32 1664, %v991_v2 }
  0x28   : > { %v743_v53 = vadd.f32 %v727_v44, %v711_v41  ;;  %v742_v58 = vadd.f32 %v726_v47, %v710_v46  ;;  %883 = vmatmul.mubr.msk.f32.vlgmr.msra.gmra.mxu0 %vm112_vm6, %v75_v30  ;;  %vm117_vm9 = vcmp.lt.s32.totalorder %v100_v49, %v994_v4  ;;  %vm116_vm10 = vcmp.lt.s32.totalorder %v99_v50, %v994_v4 }
  0x29   : > { %vm119_vm11 = vcmp.lt.s32.totalorder %v102_v51, %v994_v4  ;;  %756 = vst [vmem:[#allocation3 + $0x50] sm:$0xff] %v740_v52  ;;  %v133_v61 = vsel %vm117_vm9, %v80_v48, 0.0  ;;  %888 = vmatprep.subr.msk.mxu0 %vm117_vm9, %v80_v48  ;;  %887 = vmatmul.mubr.msk.f32.vlgmr.msra.gmra.mxu1 %vm114_vm8, %v77_v36  ;;  %v132_v62 = vsel %vm116_vm10, %v79_v54, 0.0  ;;  %vm118_vm12 = vcmp.lt.s32.totalorder %v101_v56, %v994_v4  ;;  %v140_v56 = vld [vmem:[#allocation2] sm:$0xff] }
  0x2a   : > { %759 = vst [vmem:[#allocation3 + $0x48] sm:$0xff] %v743_v53  ;;  %v135_v0 = vsel %vm119_vm11, %v82_v55, 0.0  ;;  %758 = vst [vmem:[#allocation3 + $0x8] sm:$0xff] %v742_v58  ;;  %v729_v6 = vmul.f32 %v133_v61, %v133_v61  ;;  %889 = vmatpush1.xpose.msk.msra.mxu0 %vm116_vm10, %v79_v54  ;;  %v728_v7 = vmul.f32 %v132_v62, %v132_v62  ;;  %892 = vmatprep.subr.msk.mxu1 %vm119_vm11, %v82_v55 }
  0x2b   : > { %v731_v8 = vmul.f32 %v135_v0, %v135_v0  ;;  %v134_v9 = vsel %vm118_vm12, %v81_v60, 0.0  ;;  %893 = vmatpush1.xpose.msk.msra.mxu1 %vm118_vm12, %v81_v60  ;;  %890 = vmatprep.mubr.msk.f32.mxu0 %vm117_vm9, %v80_v48  ;;  %vm121_vm13 = vcmp.lt.s32.totalorder %v1098_v57, %v994_v4  ;;  %v103_v13 = vadd.s32 1536, %v991_v2 }
  0x2c   : > { %v730_v11 = vmul.f32 %v134_v9, %v134_v9  ;;  %v106_v14 = vadd.s32 1920, %v991_v2  ;;  %v745_v15 = vadd.f32 %v729_v6, %v713_v59  ;;  %v744_v16 = vadd.f32 %v728_v7, %v712_v63  ;;  %894 = vmatprep.mubr.msk.f32.mxu1 %vm119_vm11, %v82_v55  ;;  %896 = vmatprep.subr.msk.mxu0 %vm121_vm13, %v84_v5  ;;  %v771_v61 = vld [vmem:[#allocation3 + $0x30] sm:$0xff] (%p62_p5)  ;;  %v772_v62 = vld [vmem:[#allocation3] sm:$0xff] (%p62_p5) }
  0x2d   : > { %v747_v17 = vadd.f32 %v731_v8, %v715_v3  ;;  %v137_v18 = vsel %vm121_vm13, %v84_v5, 0.0  ;;  %891 = vmatmul.mubr.msk.f32.vlgmr.msra.gmra.mxu0 %vm116_vm10, %v79_v54  ;;  %vm120_vm14 = vcmp.lt.s32.totalorder %v103_v13, %v994_v4  ;;  %v105_v28 = vadd.s32 1792, %v991_v2  ;;  %v773_v63 = vld [vmem:[#allocation3 + $0x58] sm:$0xff] (%p62_p5) }
  0x2e   : > { %v746_v21 = vadd.f32 %v730_v11, %v714_v10  ;;  %v733_v22 = vmul.f32 %v137_v18, %v137_v18  ;;  %vm123_vm15 = vcmp.lt.s32.totalorder %v106_v14, %v994_v4  ;;  %761 = vst [vmem:[#allocation3 + $0x20] sm:$0xff] %v745_v15  ;;  %760 = vst [vmem:[#allocation3 + $0x40] sm:$0xff] %v744_v16  ;;  %895 = vmatmul.mubr.msk.f32.vlgmr.msra.gmra.mxu1 %vm118_vm12, %v81_v60  ;;  %v774_v3 = vld [vmem:[#allocation3 + $0x18] sm:$0xff] (%p62_p5)  ;;  %v776_v8 = vld [vmem:[#allocation3 + $0x68] sm:$0xff] (%p62_p5) }
  0x2f   : > { %763 = vst [vmem:[#allocation3 + $0x38] sm:$0xff] %v747_v17  ;;  %v136_v23 = vsel %vm120_vm14, %v83_v12, 0.0  ;;  %897 = vmatpush1.xpose.msk.msra.mxu0 %vm120_vm14, %v83_v12  ;;  %v139_v25 = vsel %vm123_vm15, %v86_v20, 0.0  ;;  %900 = vmatprep.subr.msk.mxu1 %vm123_vm15, %v86_v20  ;;  %vm122_vm1 = vcmp.lt.s32.totalorder %v105_v28, %v994_v4  ;;  %v787_v0 = vadd.f32 (%p62_p5), %v772_v62, %v771_v61 }
  0x30   : > { %762 = vst [vmem:[#allocation3 + $0x10] sm:$0xff] %v746_v21  ;;  %v749_v29 = vadd.f32 %v733_v22, %v717_v19  ;;  %v732_v30 = vmul.f32 %v136_v23, %v136_v23  ;;  %v735_v31 = vmul.f32 %v139_v25, %v139_v25  ;;  %898 = vmatprep.mubr.msk.f32.mxu0 %vm121_vm13, %v84_v5  ;;  %v138_v2 = vsel %vm122_vm1, %v85_v27, 0.0  ;;  %v775_v6 = vld [vmem:[#allocation3 + $0x50] sm:$0xff] (%p62_p5) }
  0x31   : > { %902 = vmatprep.mubr.msk.f32.mxu1 %vm123_vm15, %v86_v20  ;;  %901 = vmatpush1.xpose.msk.msra.mxu1 %vm122_vm1, %v85_v27  ;;  %v734_v35 = vmul.f32 %v138_v2, %v138_v2  ;;  %v788_v5 = vadd.f32 (%p62_p5), %v787_v0, %v773_v63  ;;  %v777_v10 = vld [vmem:[#allocation3 + $0x8] sm:$0xff] (%p62_p5) }
  0x32   : > { %765 = vst [vmem:[#allocation3 + $0x70] sm:$0xff] %v749_v29  ;;  %v748_v32 = vadd.f32 %v732_v30, %v716_v24  ;;  %v751_v33 = vadd.f32 %v735_v31, %v719_v26  ;;  %899 = vmatmul.mubr.msk.f32.vlgmr.msra.gmra.mxu0 %vm120_vm14, %v83_v12  ;;  %v778_v12 = vld [vmem:[#allocation3 + $0x48] sm:$0xff] (%p62_p5) }
  0x33   : > { %v750_v36 = vadd.f32 %v734_v35, %v718_v34  ;;  %v789_v7 = vadd.f32 (%p62_p5), %v788_v5, %v774_v3 }
  0x34   : > { %764 = vst [vmem:[#allocation3 + $0x60] sm:$0xff] %v748_v32  ;;  %767 = vst [vmem:[#allocation3 + $0x28] sm:$0xff] %v751_v33  ;;  %903 = vmatmul.mubr.msk.f32.vlgmr.msra.gmra.mxu1 %vm122_vm1, %v85_v27  ;;  %v840_v32 = vshrl.u32 (%p62_p5), %v90_v1, 7 }
  0x35   : > { %766 = vst [vmem:[#allocation3 + $0x78] sm:$0xff] %v750_v36  ;;  %v790_v9 = vadd.f32 (%p62_p5), %v789_v7, %v775_v6  ;;  %v779_v14 = vld [vmem:[#allocation3 + $0x40] sm:$0xff] (%p62_p5) }
  0x36   :  { %v780_v16 = vld [vmem:[#allocation3 + $0x20] sm:$0xff] (%p62_p5)  ;;  %v782_v20 = vld [vmem:[#allocation3 + $0x38] sm:$0xff] (%p62_p5)  ;;  %v841_v34 = vsub.s32 (%p62_p5), 0, %v840_v32 }
  0x37   :  { %v791_v11 = vadd.f32 (%p62_p5), %v790_v9, %v776_v8  ;;  %v781_v18 = vld [vmem:[#allocation3 + $0x10] sm:$0xff] (%p62_p5) }
  0x39   :  { %v792_v13 = vadd.f32 (%p62_p5), %v791_v11, %v777_v10  ;;  %v784_v24 = vld [vmem:[#allocation3 + $0x70] sm:$0xff] (%p62_p5) }
  0x3b   :  { %v793_v15 = vadd.f32 (%p62_p5), %v792_v13, %v778_v12  ;;  %v783_v22 = vld [vmem:[#allocation3 + $0x60] sm:$0xff] (%p62_p5)  ;;  %v786_v28 = vld [vmem:[#allocation3 + $0x28] sm:$0xff] (%p62_p5) }
  0x3c   :  { %v785_v26 = vld [vmem:[#allocation3 + $0x78] sm:$0xff] (%p62_p5) }
  0x3d   :  { %v794_v17 = vadd.f32 (%p62_p5), %v793_v15, %v779_v14 }
  0x3f   :  { %v795_v19 = vadd.f32 (%p62_p5), %v794_v17, %v780_v16 }
  0x41   :  { %v796_v21 = vadd.f32 (%p62_p5), %v795_v19, %v781_v18 }
  0x43   :  { %v797_v23 = vadd.f32 (%p62_p5), %v796_v21, %v782_v20 }
  0x45   :  { %v798_v25 = vadd.f32 (%p62_p5), %v797_v23, %v783_v22 }
  0x47   :  { %v799_v27 = vadd.f32 (%p62_p5), %v798_v25, %v784_v24 }
  0x49   :  { %v800_v29 = vadd.f32 (%p62_p5), %v799_v27, %v785_v26 }
  0x4b   :  { %v801_v30 = vadd.f32 (%p62_p5), %v800_v29, %v786_v28 }
  0x4d   :  { %802 = vadd.xlane.f32.xlu0 (%p62_p5), %v801_v30 }
  0xd6   :  { %v803_v31 = vpop.xlane.xlu0 (%p62_p5), %802 }
  0xd7   :  { %807 = vxpose.xlu0.b32.start.end [1/1] (short) (narrow) (%p62_p5), %v803_v31, 8 }
  0xe4   : > { %v207_v37 = vpop.f32.mrf.mxu0  ;;  %v277_v38 = vpop.f32.mrf.mxu1 }
  0xe5   : > { %v278_v41 = vadd.f32 %v277_v38, %v207_v37 }
  0xe6   : > { %v209_v39 = vpop.f32.mrf.mxu0  ;;  %v279_v40 = vpop.f32.mrf.mxu1 }
  0xe8   : > { %v347_v42 = vpop.f32.mrf.mxu0 }
  0xe9   : > { %v348_v43 = vadd.f32 %v347_v42, %v278_v41  ;;  %v417_v44 = vpop.f32.mrf.mxu1 }
  0xea   : > { %v349_v45 = vpop.f32.mrf.mxu0 }
  0xeb   : > { %v418_v46 = vadd.f32 %v417_v44, %v348_v43  ;;  %v419_v47 = vpop.f32.mrf.mxu1 }
  0xed   : > { %v487_v48 = vpop.f32.mrf.mxu0 }
  0xee   : > { %v488_v4 = vadd.f32 %v487_v48, %v418_v46  ;;  %v557_v49 = vpop.f32.mrf.mxu1 }
  0xef   : > { %v489_v50 = vpop.f32.mrf.mxu0 }
  0xf0   : > { %v558_v51 = vadd.f32 %v557_v49, %v488_v4  ;;  %v559_v52 = vpop.f32.mrf.mxu1 }
  0xf2   : > { %v627_v53 = vpop.f32.mrf.mxu0 }
  0xf3   : > { %v628_v54 = vadd.f32 %v627_v53, %v558_v51 }
  0xf4   : > { %v629_v55 = vpop.f32.mrf.mxu0  ;;  %v697_v57 = vpop.f32.mrf.mxu1 }
  0xf5   : > { %v698_v58 = vadd.f32 %v697_v57, %v628_v54  ;;  %64 = sbr.rel (!%p62_p5) target bundleno = 25 (0x19), region = 45 }
  0xf6   : > { %v699_v59 = vpop.f32.mrf.mxu1 }
  0xf7   : > { %v701_v60 = vadd.f32 %v698_v58, %v140_v56 }
  0xf9   : > { %703 = vst.msk [vmem:[#allocation2] sm:$0xff] %vm42_vm0, %v701_v60 }
 0x100   :  { %v804_v33 = vld [vmem:[#allocation2] sm:$0xff] }
 0x101   :  { %v805_v2 = vmul.f32 -2.0, %v804_v33 }
 0x103   :  { %v806_v36 = vadd.f32 %v805_v2, %v803_v31 }
 0x153   :  { %v823_v35 = vpop.trf.xlu0 }
 0x154   :  { %v842_v37 = vrot.slane %v823_v35, %v841_v34 }
 0x156   :  { %v843_v38 = vadd.f32 %v842_v37, %v806_v36 }
 0x158   :  { %845 = vst.msk [vmem:[#allocation7] sm:$0xff] %vm42_vm0, %v843_v38 }
 0x159   :  { %946 = shalt.err (!%p943_p10)
}
 0x15a   :  { %855 = dma.vmem_to_hbm [thread:$0]  %s853_s18, 128, %s1178_s1, [#allocation6]  }
 0x15b   :  { %961 = dma.done.wait [#allocation6], 128  }
 0x15c   :  { %962 = vsyncadd [#allocation6], 4294967168 }
 0x15d   :  { %859 = vsyncpa [#allocation5], 1 }
 0x15e   :  { %860 = vsyncpa [#allocation6], 1 }

</bundles_post_ra>
